<compile_context>
chip_gen: v6e
topology: v6e:2x2x1
jax: 0.10.0
libtpu: 0.0.40
codegen_flags: <defaults>
</compile_context>

<pallas_src>
import functools

import jax
import jax.numpy as jnp
from jax import lax
from jax.experimental import pallas as pl
from jax.experimental.pallas import tpu as pltpu


def _round_up(x, m):
    return (x + m - 1) // m * m


def _vmem_budget_bytes():
    """~75% of physical VMEM (48 MiB on v7x, 96 MiB on v5e/v6e); safe fallback."""
    cap = 64 * 1024 * 1024
    try:
        info = pltpu.get_tpu_info()
        cap = int(getattr(info, "vmem_capacity_bytes", cap) or cap)
    except Exception:
        pass
    return (cap * 3) // 4


def _pick_tiles(M, P128, D, N, tm_cap, tp_cap, bank_bytes, budget):
    """Largest (TM, TP) whose double-buffered working set fits the VMEM budget."""
    TM = min(_round_up(M, 8), _round_up(max(tm_cap, 8), 8))
    TP = min(P128, _round_up(max(tp_cap, 128), 128))

    def vmem_use(tm_, tp_):
        keys = 2 * tm_ * D * 4
        addr = 2 * N * D * 4
        bank = 2 * N * tp_ * bank_bytes
        out = 2 * tm_ * tp_ * 4
        return keys + addr + bank + out + (2 << 20)   # + Mosaic internal headroom

    while vmem_use(TM, TP) > budget and (TP > 128 or TM > 8):
        if TP >= TM and TP > 128:
            TP = max(128, _round_up(TP // 2, 128))
        elif TM > 8:
            TM = max(8, _round_up(TM // 2, 8))
        else:
            break

    # Megacore (v7x): if only one P tile would exist and P splits evenly into two
    # 128-multiples, halve TP so the "parallel" axis has extent >= 2.
    if P128 // TP < 2 and P128 >= 256 and P128 % 256 == 0:
        TP = min(TP, P128 // 2)
    return TM, TP


def _soft_addressing_kernel(keys_ref, addr_ref, bank_ref, out_ref):
    # keys_ref: [TM, D]   addr_ref: [N, D]   bank_ref: [N, TP]   out_ref: [TM, TP]
    # logits = keys @ addr^T, contracting on D (no in-kernel transpose needed).
    logits = lax.dot_general(
        keys_ref[...], addr_ref[...],
        dimension_numbers=(((1,), (1,)), ((), ())),
        preferred_element_type=jnp.float32)                       # [TM, N]
    m = jnp.max(logits, axis=-1, keepdims=True)
    e = jnp.exp(logits - m)
    probs = e / jnp.sum(e, axis=-1, keepdims=True)                # exact softmax (f32)

    # Dominant matmul: probs @ bank on the MXU (bf16-native path when bank is
    # streamed as bf16), accumulating in f32.
    out_ref[...] = jnp.dot(probs.astype(bank_ref.dtype), bank_ref[...],
                           preferred_element_type=jnp.float32).astype(out_ref.dtype)


@functools.partial(jax.jit, static_argnames=("tm", "tp", "bank_dtype"))
def soft_address_space_forward(selector, address_space, param_bank, *,
                               tm=1024, tp=2048, bank_dtype=jnp.bfloat16):
    """Pallas implementation of SoftAddressSpace.forward.

    selector:      [*A, address_size]
    address_space: [num_addresses, address_size]
    param_bank:    [num_addresses, *B]
    returns:       [*A, *B]   (float32)

    bank_dtype=jnp.bfloat16 halves the dominant HBM stream (f32 accumulation is
    kept); pass jnp.float32 for bit-closer parity with the f32 reference.
    """
    A = selector.shape[:-1]
    D = selector.shape[-1]                      # address_size
    N = address_space.shape[0]                  # num_addresses
    B = param_bank.shape[1:]

    flat_keys = selector.reshape(-1, D).astype(jnp.float32)          # [M, D]
    flat_bank = param_bank.reshape(N, -1).astype(bank_dtype)         # [N, P]
    addr = address_space.astype(jnp.float32)                         # [N, D]
    M = flat_keys.shape[0]
    P = flat_bank.shape[1]
    bank_bytes = jnp.dtype(bank_dtype).itemsize

    budget = _vmem_budget_bytes()
    P128 = _round_up(P, 128)
    TM, TP = _pick_tiles(M, P128, D, N, tm, tp, bank_bytes, budget)
    M_pad = _round_up(M, TM)
    P_pad = _round_up(P, TP)

    # Explicit zero padding keeps edge tiles deterministic (padded key rows give a
    # uniform-but-discarded softmax; padded bank columns give zeros, sliced off).
    if M_pad != M:
        flat_keys = jnp.pad(flat_keys, ((0, M_pad - M), (0, 0)))
    if P_pad != P:
        flat_bank = jnp.pad(flat_bank, ((0, 0), (0, P_pad - P)))

    n_p = P_pad // TP
    n_m = M_pad // TM
    grid = (n_p, n_m)

    cost = pl.CostEstimate(
        flops=n_p * 2 * M_pad * D * N + 2 * M_pad * N * P_pad,
        transcendentals=n_p * M_pad * N,
        bytes_accessed=(4 * n_p * M_pad * D        # keys: re-read once per P tile (small)
                        + 4 * N * D                # address space: resident
                        + bank_bytes * N * P_pad   # bank: read from HBM exactly once
                        + 4 * M_pad * P_pad),      # output
    )

    # NOTE: for very large num_addresses, addr / the (N, TP) bank block / the
    # (TM, N) logits are not tiled over N; _pick_tiles shrinks TP/TM against the
    # VMEM budget, and an N grid axis with online-softmax accumulation would be
    # the next step beyond that.
    out_flat = pl.pallas_call(
        _soft_addressing_kernel,
        out_shape=jax.ShapeDtypeStruct((M_pad, P_pad), jnp.float32),
        grid=grid,
        in_specs=[
            pl.BlockSpec((TM, D), lambda p, m: (m, 0)),   # keys: per-M tile
            pl.BlockSpec((N, D), lambda p, m: (0, 0)),    # address space: resident
            pl.BlockSpec((N, TP), lambda p, m: (0, p)),   # bank: constant over inner sweep
        ],
        out_specs=pl.BlockSpec((TM, TP), lambda p, m: (m, p)),
        compiler_params=pltpu.CompilerParams(
            dimension_semantics=("parallel", "arbitrary"),
            vmem_limit_bytes=budget,
        ),
        cost_estimate=cost,
    )(flat_keys, addr, flat_bank)

    return out_flat[:M, :P].reshape(*A, *B)


def reference_forward(selector, address_space, param_bank):
    """Pure-JAX reference mirroring the PyTorch semantics (full f32 precision)."""
    A = selector.shape[:-1]
    D = selector.shape[-1]
    N = address_space.shape[0]
    B = param_bank.shape[1:]
    flat_keys = selector.reshape(-1, D)
    logits = jnp.matmul(flat_keys, address_space.T, precision=lax.Precision.HIGHEST)
    probs = jax.nn.softmax(logits, axis=-1)
    out = jnp.matmul(probs, param_bank.reshape(N, -1), precision=lax.Precision.HIGHEST)
    return out.reshape(*A, *B)


if __name__ == "__main__":
    # Module config (from __init__): num_addresses, address_size.
    num_addresses = 16
    address_size = 32

    key = jax.random.PRNGKey(0)
    k_addr, k_sel, k_bank, k_sel2, k_bank2 = jax.random.split(key, 5)

    # nn.init.normal_(self.address_space) -> standard normal.
    address_space = jax.random.normal(
        k_addr, (num_addresses, address_size), dtype=jnp.float32)

    # Case 1: module-sized example, f32 bank streaming -> tight parity check.
    # selector [2, 8, 32], param_bank [16, 4, 4].
    selector = jax.random.normal(k_sel, (2, 8, address_size), dtype=jnp.float32)
    param_bank = jax.random.normal(k_bank, (num_addresses, 4, 4), dtype=jnp.float32)

    out = jax.block_until_ready(
        soft_address_space_forward(selector, address_space, param_bank,
                                   bank_dtype=jnp.float32))
    ref = reference_forward(selector, address_space, param_bank)
    assert out.shape == (2, 8, 4, 4), out.shape
    assert jnp.allclose(out, ref, atol=5e-3, rtol=5e-3), \
        float(jnp.max(jnp.abs(out - ref)))

    # Case 2: small tile caps force a real (2, 2) grid, exercising the P-outer
    # tiling (bank fetched once per P tile, reused across the inner M sweep) and
    # the default bf16 bank streaming with f32 accumulation.
    selector2 = jax.random.normal(
        k_sel2, (4, 64, address_size), dtype=jnp.float32)            # M = 256
    param_bank2 = jax.random.normal(
        k_bank2, (num_addresses, 16, 16), dtype=jnp.float32)         # P = 256
    out2 = jax.block_until_ready(
        soft_address_space_forward(selector2, address_space, param_bank2,
                                   tm=128, tp=128))
    ref2 = reference_forward(selector2, address_space, param_bank2)
    assert out2.shape == (4, 64, 16, 16), out2.shape
    assert jnp.allclose(out2, ref2, atol=3e-2, rtol=3e-2), \
        float(jnp.max(jnp.abs(out2 - ref2)))

    print("KERNEL_OK")
</pallas_src>

<mosaic_0001>
module attributes {stable_mosaic.version = 11 : i64} {
  func.func @_soft_addressing_kernel(%arg0: i32, %arg1: i32, %arg2: memref<16x32xf32, #tpu.memory_space<vmem>>, %arg3: memref<16x32xf32, #tpu.memory_space<vmem>>, %arg4: memref<16x128xf32, #tpu.memory_space<vmem>>, %arg5: memref<16x128xf32, #tpu.memory_space<vmem>>) attributes {dimension_semantics = [#tpu.dimension_semantics<parallel>, #tpu.dimension_semantics<arbitrary>], iteration_bounds = array<i64: 1, 1>, scalar_prefetch = 0 : i64, scratch_operands = 0 : i64, tpu.core_type = #tpu.core_type<tc>, window_params = [{transform_indices = @transform_0, window_bounds = array<i64: 16, 32>}, {pipeline_mode = #tpu.pipeline_mode<synchronous>, transform_indices = @transform_1, window_bounds = array<i64: 16, 32>}, {transform_indices = @transform_2, window_bounds = array<i64: 16, 128>}, {transform_indices = @transform_3, window_bounds = array<i64: 16, 128>}]} {
    %c0 = arith.constant 0 : index
    %c0_0 = arith.constant 0 : index
    %0 = vector.load %arg2[%c0, %c0_0] : memref<16x32xf32, #tpu.memory_space<vmem>>, vector<16x32xf32>
    %c0_1 = arith.constant 0 : index
    %c0_2 = arith.constant 0 : index
    %1 = vector.load %arg3[%c0_1, %c0_2] : memref<16x32xf32, #tpu.memory_space<vmem>>, vector<16x32xf32>
    %cst = arith.constant dense<0.000000e+00> : vector<16x16xf32>
    %2 = tpu.matmul %0, %1, %cst {dimension_numbers = #tpu.dot_dimension_numbers<[1], [1], [0], [0], [0, 0, 1, 0], [], []>} : vector<16x32xf32>, vector<16x32xf32>, vector<16x16xf32> -> vector<16x16xf32>
    %cst_3 = arith.constant dense<0xFF800000> : vector<16xf32>
    %3 = vector.multi_reduction <maximumf>, %2, %cst_3 [1] : vector<16x16xf32> to vector<16xf32>
    %4 = vector.shape_cast %3 : vector<16xf32> to vector<16x1xf32>
    %5 = vector.broadcast %4 : vector<16x1xf32> to vector<16x16xf32>
    %6 = arith.subf %2, %5 : vector<16x16xf32>
    %7 = math.exp %6 : vector<16x16xf32>
    %cst_4 = arith.constant dense<0.000000e+00> : vector<16xf32>
    %8 = vector.multi_reduction <add>, %7, %cst_4 [1] : vector<16x16xf32> to vector<16xf32>
    %9 = vector.shape_cast %8 : vector<16xf32> to vector<16x1xf32>
    %10 = vector.broadcast %9 : vector<16x1xf32> to vector<16x16xf32>
    %11 = arith.divf %7, %10 : vector<16x16xf32>
    %c0_5 = arith.constant 0 : index
    %c0_6 = arith.constant 0 : index
    %12 = vector.load %arg4[%c0_5, %c0_6] : memref<16x128xf32, #tpu.memory_space<vmem>>, vector<16x128xf32>
    %cst_7 = arith.constant dense<0.000000e+00> : vector<16x128xf32>
    %13 = tpu.matmul %11, %12, %cst_7 {dimension_numbers = #tpu.dot_dimension_numbers<[1], [0], [0], [1], [0, 0, 1, 1], [], []>} : vector<16x16xf32>, vector<16x128xf32>, vector<16x128xf32> -> vector<16x128xf32>
    %c0_8 = arith.constant 0 : index
    %c0_9 = arith.constant 0 : index
    %14 = vector.load %arg5[%c0_8, %c0_9] : memref<16x128xf32, #tpu.memory_space<vmem>>, vector<16x128xf32>
    tpu.vector_store %arg5[%c0_8, %c0_9], %13 {strides = array<i32>} : memref<16x128xf32, #tpu.memory_space<vmem>>, vector<16x128xf32>,
    return
  }
  func.func @transform_0(%arg0: i32, %arg1: i32) -> (i32, i32) {
    %c0_i32 = arith.constant 0 : i32
    %c0_i32_0 = arith.constant 0 : i32
    return %arg1, %c0_i32 : i32, i32
  }
  func.func @transform_1(%arg0: i32, %arg1: i32) -> (i32, i32) {
    %c0_i32 = arith.constant 0 : i32
    %c0_i32_0 = arith.constant 0 : i32
    %c0_i32_1 = arith.constant 0 : i32
    return %c0_i32, %c0_i32_0 : i32, i32
  }
  func.func @transform_2(%arg0: i32, %arg1: i32) -> (i32, i32) {
    %c0_i32 = arith.constant 0 : i32
    %c0_i32_0 = arith.constant 0 : i32
    return %c0_i32, %arg0 : i32, i32
  }
  func.func @transform_3(%arg0: i32, %arg1: i32) -> (i32, i32) {
    %c0_i32 = arith.constant 0 : i32
    return %arg1, %arg0 : i32, i32
  }
}

</mosaic_0001>

<bundles_post_ra>
// kernel: soft_address_space_forward.1
= control target key start
LH: loop header
LB: loop body
LE: loop exit
PB: predicated region body
PF: predicated region fallthrough
CT: control target
= control target key end

     0   :  { %vm18_vm0 = vcmask 261120   ;;  %vm106_vm1 = vcmask 130048   ;;  %s304_s1 = inlined_call_operand.vmem [shape: f32[16,32], index: 1, kind: input, shape index: {}]   ;;  %s305_s0 = inlined_call_operand.vmem [shape: f32[16,32], index: 0, kind: input, shape index: {}]   ;;  %s306_s2 = inlined_call_operand.vmem [shape: f32[16,128], index: 2, kind: input, shape index: {}]   ;;  %s307_s3 = inlined_call_operand.vmem [shape: f32[16,128], index: 3, kind: output, shape index: {}]  }
   0x1   :  { %v16_v0 = vld [vmem:[%s304_s1] sm:$0xff]  ;;  %v17_v1 = vld [vmem:[%s304_s1 + $0x8] sm:$0xff] }
   0x2   :  { %v14_v2 = vld [vmem:[%s305_s0] sm:$0xff]  ;;  %232 = vmatprep.subr.msk.mxu0 %vm18_vm0, %v17_v1  ;;  %v15_v3 = vld [vmem:[%s305_s0 + $0x8] sm:$0xff] }
   0x3   :  { %236 = vmatprep.mubr.msk.f32.mxu0 %vm18_vm0, %v14_v2  ;;  %233 = vmatpush3.xpose.msk.msra.mxu0 %vm18_vm0, %v17_v1  ;;  %v130_v18 = vld [vmem:[%s306_s2 + $0x8] sm:$0xff]  ;;  %v129_v19 = vld [vmem:[%s306_s2] sm:$0xff] }
   0x4   :  { %234 = vmatprep.subr.msk.mxu0 %vm18_vm0, %v16_v0  ;;  %239 = vmatprep.subr.mxu1 %v130_v18 }
   0x5   :  { %240 = vmatpush3.msra.mxu1 %v130_v18 }
   0x6   :  { %241 = vmatprep.subr.mxu1 %v129_v19 }
   0x7   :  { %235 = vmatpush3.xpose.msk.msra.mxu0 %vm18_vm0, %v16_v0  ;;  %242 = vmatpush3.msra.mxu1 %v129_v19 }
   0xa   :  { %237 = vmatmul.mubr.msk.f32.vlgmr.msra.gmra.mxu0 %vm18_vm0, %v15_v3 }
  0xca   :  { %v238_v4 = vpop.f32.mrf.mxu0 }
  0xcb   :  { %v110_v7 = vsel %vm106_vm1, %v238_v4, -inf }
  0xcc   :  { %v97_v5 = vpop.f32.mrf.mxu0 }
  0xcd   :  { %v107_v6 = vsel %vm106_vm1, %v97_v5, -inf }
  0xce   :  { %108 = vmax.xlane.f32.xlu0 %v107_v6 }
  0xd2   :  { %111 = vmax.xlane.f32.xlu0 %v110_v7 }
 0x157   :  { %v109_v8 = vpop.xlane.xlu0 %108 }
 0x158   :  { %v113_v9 = vsub.f32 %v97_v5, %v109_v8 }
 0x15a   :  { %v115_v10 = vmul.f32 1.442695, %v113_v9 }
 0x15b   :  { %v112_v11 = vpop.xlane.xlu0 %111 }
 0x15c   :  { %246 = vpow2.f32 %v115_v10  ;;  %v114_v12 = vsub.f32 %v238_v4, %v112_v11 }
 0x15e   :  { %v117_v13 = vmul.f32 1.442695, %v114_v12 }
 0x160   :  { %248 = vpow2.f32 %v117_v13 }
 0x169   :  { %v247_v14 = vpop.eup %246 }
 0x16a   :  { %v119_v15 = vsel %vm106_vm1, %v247_v14, 0.0 }
 0x16b   :  { %120 = vadd.xlane.f32.xlu1 %v119_v15 }
 0x16d   :  { %v249_v16 = vpop.eup %248 }
 0x16e   :  { %v122_v17 = vsel %vm106_vm1, %v249_v16, 0.0 }
 0x16f   :  { %123 = vadd.xlane.f32.xlu1 %v122_v17 }
 0x1f4   :  { %v121_v20 = vpop.xlane.xlu1 %120 }
 0x1f5   :  { %250 = vrcp.f32 %v121_v20 }
 0x1f8   :  { %v124_v21 = vpop.xlane.xlu1 %123 }
 0x1f9   :  { %252 = vrcp.f32 %v124_v21 }
 0x202   :  { %v251_v22 = vpop.eup %250 }
 0x203   :  { %v126_v23 = vmul.f32 %v251_v22, %v247_v14 }
 0x205   :  { %243 = vmatprep.mubr.msk.f32.mxu1 %vm106_vm1, %v126_v23 }
 0x206   :  { %v253_v24 = vpop.eup %252 }
 0x207   :  { %v128_v25 = vmul.f32 %v253_v24, %v249_v16 }
 0x209   :  { %244 = vmatmul.mubr.msk.f32.vlgmr.msra.gmra.mxu1 %vm106_vm1, %v128_v25 }
 0x2c9   :  { %v245_v26 = vpop.f32.mrf.mxu1 }
 0x2ca   :  { %213 = vst [vmem:[%s307_s3 + $0x8] sm:$0xff] %v245_v26 }
 0x2cb   :  { %v203_v27 = vpop.f32.mrf.mxu1 }
 0x2cc   :  { %212 = vst [vmem:[%s307_s3] sm:$0xff] %v203_v27 }

</bundles_post_ra>
